<compile_context>
chip_gen: v5e
topology: v5e:2x2
jax: 0.10.0
libtpu: 0.0.40
codegen_flags: <defaults>
</compile_context>

<pallas_src>
import functools

import jax
import jax.numpy as jnp
from jax import lax
from jax.experimental import pallas as pl
from jax.experimental.pallas import tpu as pltpu


_VMEM_LIMIT = 48 * 1024 * 1024   # < v7x 64 MiB physical; plenty for 4 MiB double-buffered tiles
_TILE_BYTES = 4 * 1024 * 1024    # target bytes of x per stage-2 tile (amortizes ~0.35us/step)
_MASK_DTYPE = jnp.bfloat16       # {0,1} exactly representable; halves mask HBM traffic vs f32


# ---------------------------------------------------------------------------
# Stage 1 helpers: separable 1D max-pool (stride 1, "same" output, torch trim).
# Zero padding is equivalent to -inf padding because the mask values are {0,1}.
# ---------------------------------------------------------------------------
def _pad_axis_zeros(m, axis, before, after):
    parts = []
    if before > 0:
        shp = list(m.shape); shp[axis] = before
        parts.append(jnp.zeros(shp, m.dtype))
    parts.append(m)
    if after > 0:
        shp = list(m.shape); shp[axis] = after
        parts.append(jnp.zeros(shp, m.dtype))
    if len(parts) == 1:
        return m
    return jnp.concatenate(parts, axis=axis)


def _maxpool_same_axis(m, axis, block_size):
    """1D max-pool along `axis`, stride 1, pad=block_size//2, output size == input.

    Matches torch max_pool + trailing trim for even block_size.  Runs inside the
    small per-batch stage-1 tile, off the x-sized hot path.
    """
    pad = block_size // 2
    size = m.shape[axis]
    mp = _pad_axis_zeros(m, axis, pad, block_size - 1 - pad)
    acc = None
    for k in range(block_size):
        sl = [slice(None)] * m.ndim
        sl[axis] = slice(k, k + size)
        piece = mp[tuple(sl)]
        acc = piece if acc is None else jnp.maximum(acc, piece)
    return acc


# ---------------------------------------------------------------------------
# Stage 1: per-batch seed threshold + separable 3D dilation; emits the unscaled
# {0,1} keep mask (bf16) and accumulates the global keep count in a (1,1) output.
# ---------------------------------------------------------------------------
def _dropblock_mask_kernel(u_ref, m_ref, sum_ref, *, gamma, block_size):
    n = pl.program_id(0)

    u = u_ref[...]                                   # (1, D, H, W) uniform [0, 1)
    seed = (u < gamma).astype(jnp.float32)

    pooled = seed
    for axis in (1, 2, 3):                           # D, H, W (separable dilation)
        pooled = _maxpool_same_axis(pooled, axis, block_size)

    block_mask = 1.0 - pooled                        # 1 = keep, 0 = dropped
    m_ref[...] = block_mask.astype(m_ref.dtype)

    @pl.when(n == 0)
    def _():
        sum_ref[...] = jnp.zeros_like(sum_ref)
    sum_ref[...] = sum_ref[...] + jnp.sum(block_mask)


# ---------------------------------------------------------------------------
# Stage 2: hot path — stream x through VMEM in lane-dense tiles, multiply by the
# per-(n, spatial) keep mask (broadcast over channels) and the SMEM scalar scale.
# ---------------------------------------------------------------------------
def _dropblock_apply_kernel(scale_ref, m_ref, x_ref, o_ref):
    # scale_ref: (1,1) SMEM f32;  m_ref: (1,1,bs) bf16;  x_ref/o_ref: (1,bc,bs)
    scale = scale_ref[0, 0]
    m = m_ref[...].astype(jnp.float32) * scale       # scale the tiny mask tile, not x
    o_ref[...] = (x_ref[...] * m).astype(o_ref.dtype)


def _choose_tile(dim, target, quantum):
    """Largest multiple of `quantum` dividing `dim` and <= target; `dim` if it fits;
    otherwise the largest multiple of `quantum` <= target (caller uses a cdiv grid)."""
    if dim <= target:
        return dim
    cap = max(quantum, target - (target % quantum))
    for cand in range(cap, 0, -quantum):
        if dim % cand == 0:
            return cand
    return cap


def dropblock3d(x, u, drop_prob, block_size, training=True, donate_x=False):
    """DropBlock3D forward.  x: (N, C, D, H, W);  u: uniform(0,1) of shape (N, D, H, W)."""
    if (not training) or drop_prob == 0.0:
        return x

    N, C, D, H, W = x.shape
    S = D * H * W
    gamma = drop_prob / (block_size ** 3)

    # ---- Stage 1: per-batch mask kernel + global keep-count accumulator. ----
    mask_kernel = functools.partial(_dropblock_mask_kernel, gamma=gamma, block_size=block_size)
    block_mask, total = pl.pallas_call(
        mask_kernel,
        out_shape=(jax.ShapeDtypeStruct((N, D, H, W), _MASK_DTYPE),
                   jax.ShapeDtypeStruct((1, 1), jnp.float32)),
        grid=(N,),
        in_specs=[pl.BlockSpec((1, D, H, W), lambda n: (n, 0, 0, 0))],
        out_specs=(pl.BlockSpec((1, D, H, W), lambda n: (n, 0, 0, 0)),
                   pl.BlockSpec((1, 1), lambda n: (0, 0))),
        compiler_params=pltpu.CompilerParams(
            dimension_semantics=("arbitrary",),          # sum accumulator -> sequential
            vmem_limit_bytes=_VMEM_LIMIT),
    )(u)

    # Exact scalar divide (one tiny XLA op).  Clamp deviates from torch's inf/NaN
    # when *every* voxel is dropped (output is all-zero instead) — documented.
    numel = float(N * S)
    scale = (numel / jnp.maximum(total, 1.0)).astype(jnp.float32)   # (1, 1)

    # ---- Stage 2: lane-dense flattened layout (wrapper reshape = layout plumbing). ----
    x_flat = x.reshape(N, C, S)
    m_flat = block_mask.reshape(N, 1, S)

    itemsize = jnp.dtype(x.dtype).itemsize
    sub_q = max(8, 32 // itemsize)                    # 8 (f32) / 16 (bf16) / 32 (int8)
    bs_cap = max(128, (_TILE_BYTES // max(1, C * itemsize)) // 128 * 128)
    bs = _choose_tile(S, bs_cap, 128)                 # lane dim
    bc_cap = max(sub_q, (_TILE_BYTES // max(1, bs * itemsize)) // sub_q * sub_q)
    bc = _choose_tile(C, bc_cap, sub_q)               # channel (sublane) dim

    # Channel innermost -> mask tile reused across it; largest axis first (megacore).
    grid = (pl.cdiv(S, bs), N, pl.cdiv(C, bc))

    out_flat = pl.pallas_call(
        _dropblock_apply_kernel,
        out_shape=jax.ShapeDtypeStruct((N, C, S), x.dtype),
        grid=grid,
        in_specs=[
            pl.BlockSpec(memory_space=pltpu.MemorySpace.SMEM),         # scale (1,1)
            pl.BlockSpec((1, 1, bs), lambda s, n, c: (n, 0, s)),       # mask (reused over c)
            pl.BlockSpec((1, bc, bs), lambda s, n, c: (n, c, s)),      # x
        ],
        out_specs=pl.BlockSpec((1, bc, bs), lambda s, n, c: (n, c, s)),
        compiler_params=pltpu.CompilerParams(
            dimension_semantics=("parallel", "parallel", "parallel"),
            vmem_limit_bytes=_VMEM_LIMIT),
        input_output_aliases=({2: 0} if donate_x else {}),
    )(scale, m_flat, x_flat)

    return out_flat.reshape(N, C, D, H, W)


def dropblock3d_reference(x, u, drop_prob, block_size):
    """Pure-JAX reference mirroring the PyTorch module (same shared randomness u)."""
    gamma = drop_prob / (block_size ** 3)
    mask = (u < gamma).astype(jnp.float32)
    pad = block_size // 2
    pooled = lax.reduce_window(
        mask, -jnp.inf, lax.max,
        window_dimensions=(1, block_size, block_size, block_size),
        window_strides=(1, 1, 1, 1),
        padding=[(0, 0), (pad, pad), (pad, pad), (pad, pad)],
    )
    if block_size % 2 == 0:
        pooled = pooled[:, :-1, :-1, :-1]
    block_mask = 1.0 - pooled
    out = x * block_mask[:, None, :, :, :]
    out = out * block_mask.size / jnp.sum(block_mask)
    return out


if __name__ == "__main__":
    N, C, D, H, W = 2, 4, 8, 16, 16

    key = jax.random.PRNGKey(0)
    kx, ku = jax.random.split(key)
    x = jax.random.normal(kx, (N, C, D, H, W), dtype=jnp.float32)
    # Uniform field standing in for torch.rand(N, D, H, W) — shared by kernel and reference.
    u = jax.random.uniform(ku, (N, D, H, W), dtype=jnp.float32)

    # Odd block size (common case) and even block size (torch's trailing-trim path).
    for drop_prob, block_size in ((0.3, 3), (0.3, 4)):
        out = jax.block_until_ready(dropblock3d(x, u, drop_prob, block_size, training=True))
        ref = jax.block_until_ready(dropblock3d_reference(x, u, drop_prob, block_size))
        assert out.shape == x.shape and out.dtype == x.dtype
        assert jnp.allclose(out, ref, atol=1e-4, rtol=1e-4), \
            f"Pallas kernel mismatch vs reference (block_size={block_size})"

    # TODO(synk): torch.rand's RNG stream is not reproducible in JAX; the shared
    # uniform field `u` substitutes for it (same distribution, different draws).
    print("KERNEL_OK")
</pallas_src>

<mosaic_0001>
module attributes {stable_mosaic.version = 11 : i64} {
  func.func @_dropblock_mask_kernel(%arg0: i32, %arg1: memref<1x8x16x16xf32, #tpu.memory_space<vmem>>, %arg2: memref<1x8x16x16xbf16, #tpu.memory_space<vmem>>, %arg3: memref<1x1xf32, #tpu.memory_space<vmem>>) attributes {dimension_semantics = [#tpu.dimension_semantics<arbitrary>], iteration_bounds = array<i64: 2>, scalar_prefetch = 0 : i64, scratch_operands = 0 : i64, tpu.core_type = #tpu.core_type<tc>, window_params = [{transform_indices = @transform_0, window_bounds = array<i64: 1, 8, 16, 16>}, {transform_indices = @transform_1, window_bounds = array<i64: 1, 8, 16, 16>}, {pipeline_mode = #tpu.pipeline_mode<synchronous>, transform_indices = @transform_2, window_bounds = array<i64: 1, 1>}]} {
    %c0 = arith.constant 0 : index
    %c0_0 = arith.constant 0 : index
    %c0_1 = arith.constant 0 : index
    %c0_2 = arith.constant 0 : index
    %0 = vector.load %arg1[%c0, %c0_0, %c0_1, %c0_2] : memref<1x8x16x16xf32, #tpu.memory_space<vmem>>, vector<1x8x16x16xf32>
    %cst = arith.constant 0.0111111114 : f32
    %1 = vector.broadcast %cst : f32 to vector<1x8x16x16xf32>
    %2 = arith.cmpf olt, %0, %1 : vector<1x8x16x16xf32>
    %3 = arith.extui %2 : vector<1x8x16x16xi1> to vector<1x8x16x16xi32>
    %4 = arith.sitofp %3 : vector<1x8x16x16xi32> to vector<1x8x16x16xf32>
    %cst_3 = arith.constant 0.000000e+00 : f32
    %5 = vector.broadcast %cst_3 : f32 to vector<1x1x16x16xf32>
    %cst_4 = arith.constant 0.000000e+00 : f32
    %6 = vector.broadcast %cst_4 : f32 to vector<1x1x16x16xf32>
    %7 = tpu.concatenate %5, %4, %6 in 1 : vector<1x1x16x16xf32>, vector<1x8x16x16xf32>, vector<1x1x16x16xf32> -> vector<1x10x16x16xf32>
    %8 = vector.extract_strided_slice %7 {offsets = [0, 0, 0, 0], sizes = [1, 8, 16, 16], strides = [1, 1, 1, 1]} : vector<1x10x16x16xf32> to vector<1x8x16x16xf32>
    %9 = vector.extract_strided_slice %7 {offsets = [0, 1, 0, 0], sizes = [1, 8, 16, 16], strides = [1, 1, 1, 1]} : vector<1x10x16x16xf32> to vector<1x8x16x16xf32>
    %10 = arith.maximumf %8, %9 : vector<1x8x16x16xf32>
    %11 = vector.extract_strided_slice %7 {offsets = [0, 2, 0, 0], sizes = [1, 8, 16, 16], strides = [1, 1, 1, 1]} : vector<1x10x16x16xf32> to vector<1x8x16x16xf32>
    %12 = arith.maximumf %10, %11 : vector<1x8x16x16xf32>
    %cst_5 = arith.constant 0.000000e+00 : f32
    %13 = vector.broadcast %cst_5 : f32 to vector<1x8x1x16xf32>
    %cst_6 = arith.constant 0.000000e+00 : f32
    %14 = vector.broadcast %cst_6 : f32 to vector<1x8x1x16xf32>
    %15 = tpu.concatenate %13, %12, %14 in 2 : vector<1x8x1x16xf32>, vector<1x8x16x16xf32>, vector<1x8x1x16xf32> -> vector<1x8x18x16xf32>
    %16 = vector.extract_strided_slice %15 {offsets = [0, 0, 0, 0], sizes = [1, 8, 16, 16], strides = [1, 1, 1, 1]} : vector<1x8x18x16xf32> to vector<1x8x16x16xf32>
    %17 = vector.extract_strided_slice %15 {offsets = [0, 0, 1, 0], sizes = [1, 8, 16, 16], strides = [1, 1, 1, 1]} : vector<1x8x18x16xf32> to vector<1x8x16x16xf32>
    %18 = arith.maximumf %16, %17 : vector<1x8x16x16xf32>
    %19 = vector.extract_strided_slice %15 {offsets = [0, 0, 2, 0], sizes = [1, 8, 16, 16], strides = [1, 1, 1, 1]} : vector<1x8x18x16xf32> to vector<1x8x16x16xf32>
    %20 = arith.maximumf %18, %19 : vector<1x8x16x16xf32>
    %cst_7 = arith.constant 0.000000e+00 : f32
    %21 = vector.broadcast %cst_7 : f32 to vector<1x8x16x1xf32>
    %cst_8 = arith.constant 0.000000e+00 : f32
    %22 = vector.broadcast %cst_8 : f32 to vector<1x8x16x1xf32>
    %23 = tpu.concatenate %21, %20, %22 in 3 : vector<1x8x16x1xf32>, vector<1x8x16x16xf32>, vector<1x8x16x1xf32> -> vector<1x8x16x18xf32>
    %24 = vector.extract_strided_slice %23 {offsets = [0, 0, 0, 0], sizes = [1, 8, 16, 16], strides = [1, 1, 1, 1]} : vector<1x8x16x18xf32> to vector<1x8x16x16xf32>
    %25 = vector.extract_strided_slice %23 {offsets = [0, 0, 0, 1], sizes = [1, 8, 16, 16], strides = [1, 1, 1, 1]} : vector<1x8x16x18xf32> to vector<1x8x16x16xf32>
    %26 = arith.maximumf %24, %25 : vector<1x8x16x16xf32>
    %27 = vector.extract_strided_slice %23 {offsets = [0, 0, 0, 2], sizes = [1, 8, 16, 16], strides = [1, 1, 1, 1]} : vector<1x8x16x18xf32> to vector<1x8x16x16xf32>
    %28 = arith.maximumf %26, %27 : vector<1x8x16x16xf32>
    %cst_9 = arith.constant 1.000000e+00 : f32
    %29 = vector.broadcast %cst_9 : f32 to vector<1x8x16x16xf32>
    %30 = arith.subf %29, %28 : vector<1x8x16x16xf32>
    %31 = arith.truncf %30 : vector<1x8x16x16xf32> to vector<1x8x16x16xbf16>
    %c0_10 = arith.constant 0 : index
    %c0_11 = arith.constant 0 : index
    %c0_12 = arith.constant 0 : index
    %c0_13 = arith.constant 0 : index
    %32 = vector.load %arg2[%c0_10, %c0_11, %c0_12, %c0_13] : memref<1x8x16x16xbf16, #tpu.memory_space<vmem>>, vector<1x8x16x16xbf16>
    tpu.vector_store %arg2[%c0_10, %c0_11, %c0_12, %c0_13], %31 {strides = array<i32>} : memref<1x8x16x16xbf16, #tpu.memory_space<vmem>>, vector<1x8x16x16xbf16>,
    %c0_i32 = arith.constant 0 : i32
    %33 = arith.cmpi eq, %arg0, %c0_i32 : i32
    %34 = arith.extui %33 : i1 to i32
    %c0_i32_14 = arith.constant 0 : i32
    %35 = arith.cmpi ne, %34, %c0_i32_14 : i32
    scf.if %35 {
      %cst_20 = arith.constant 0.000000e+00 : f32
      %44 = vector.broadcast %cst_20 : f32 to vector<1x1xf32>
      %c0_21 = arith.constant 0 : index
      %c0_22 = arith.constant 0 : index
      %45 = vector.load %arg3[%c0_21, %c0_22] : memref<1x1xf32, #tpu.memory_space<vmem>>, vector<1x1xf32>
      tpu.vector_store %arg3[%c0_21, %c0_22], %44 {strides = array<i32>} : memref<1x1xf32, #tpu.memory_space<vmem>>, vector<1x1xf32>,
    } else {
    }
    %c0_15 = arith.constant 0 : index
    %c0_16 = arith.constant 0 : index
    %36 = vector.load %arg3[%c0_15, %c0_16] : memref<1x1xf32, #tpu.memory_space<vmem>>, vector<1x1xf32>
    %37 = vector.shape_cast %30 : vector<1x8x16x16xf32> to vector<1x1x8x16x16xf32>
    %cst_17 = arith.constant dense<0.000000e+00> : vector<1xf32>
    %38 = vector.multi_reduction <add>, %37, %cst_17 [1, 2, 3, 4] : vector<1x1x8x16x16xf32> to vector<1xf32>
    %39 = vector.shape_cast %38 : vector<1xf32> to vector<1x1x1x1x1xf32>
    %40 = vector.extract %39[0, 0, 0, 0, 0] : f32 from vector<1x1x1x1x1xf32>
    %41 = vector.broadcast %40 : f32 to vector<1x1xf32>
    %42 = arith.addf %36, %41 : vector<1x1xf32>
    %c0_18 = arith.constant 0 : index
    %c0_19 = arith.constant 0 : index
    %43 = vector.load %arg3[%c0_18, %c0_19] : memref<1x1xf32, #tpu.memory_space<vmem>>, vector<1x1xf32>
    tpu.vector_store %arg3[%c0_18, %c0_19], %42 {strides = array<i32>} : memref<1x1xf32, #tpu.memory_space<vmem>>, vector<1x1xf32>,
    return
  }
  func.func @transform_0(%arg0: i32) -> (i32, i32, i32, i32) {
    %c0_i32 = arith.constant 0 : i32
    %c0_i32_0 = arith.constant 0 : i32
    %c0_i32_1 = arith.constant 0 : i32
    %c0_i32_2 = arith.constant 0 : i32
    return %arg0, %c0_i32, %c0_i32_0, %c0_i32_1 : i32, i32, i32, i32
  }
  func.func @transform_1(%arg0: i32) -> (i32, i32, i32, i32) {
    %c0_i32 = arith.constant 0 : i32
    %c0_i32_0 = arith.constant 0 : i32
    %c0_i32_1 = arith.constant 0 : i32
    %c0_i32_2 = arith.constant 0 : i32
    return %arg0, %c0_i32, %c0_i32_0, %c0_i32_1 : i32, i32, i32, i32
  }
  func.func @transform_2(%arg0: i32) -> (i32, i32) {
    %c0_i32 = arith.constant 0 : i32
    %c0_i32_0 = arith.constant 0 : i32
    %c0_i32_1 = arith.constant 0 : i32
    return %c0_i32, %c0_i32_0 : i32, i32
  }
}

</mosaic_0001>

<bundles_post_ra>
// kernel: tpu_custom_call.1
= control target key start
LH: loop header
LB: loop body
LE: loop exit
PB: predicated region body
PF: predicated region fallthrough
CT: control target
= control target key end

     0   :  { %8 = vsyncpa [#allocation3], 0  ;;  %s1809_s0 = inlined_call_operand.hbm [shape: f32[2,8,16,16], index: 0, kind: input, shape index: {}]   ;;  %s1810_s1 = inlined_call_operand.hbm [shape: bf16[2,8,16,16], index: 1, kind: output, shape index: {0}]   ;;  %s1811_s2 = inlined_call_operand.hbm [shape: f32[1,1], index: 2, kind: output, shape index: {1}]  }
   0x1   :  { %10 = vsyncpa [#allocation3 + $0x1], 0 }
   0x2   :  { %11 = vsyncpa [#allocation4], 0 }
   0x3   :  { %13 = vsyncpa [#allocation4 + $0x1], 0 }
   0x4   :  { %14 = vsyncpa [#allocation7], 0  ;;  %s1332_s9 = smov 0   ;;  %s1334_s10 = smov 0  }
   0x5   :  { %s1336_s11 = smov 0   ;;  %s1338_s12 = smov 0  }
   0x6 LB: > { %s1353_s13 = sadd.s32 4294967295, %s1305_s12   ;;  %s958_s14 = sadd.s32 4294967294, %s1305_s12   ;;  %s1305_s12 = sphi %s1338_s12, %s1825_s12   ;;  %s1301_s11 = sphi %s1336_s11, %s1824_s11   ;;  %s1297_s10 = sphi %s1334_s10, %s1823_s10   ;;  %s1293_s9 = sphi %s1332_s9, %s1822_s9  }
   0x7   : > { %s1357_s15 = sadd.s32 1, %s1305_s12   ;;  %s27_s16 = sadd.s32 1, %s1301_s11 }
   0x8   : > { %s24_s17 = ssub.s32 %s1305_s12, %s1357_s15  ;;  %p34_p0 = scmp.ne.s32.totalorder %s1301_s11, %s1297_s10 }
   0x9   : > { %p25_p1 = scmp.eq.s32.totalorder %s24_s17, 0  ;;  %p35_p2 = scmp.eq.s32.totalorder %s1305_s12, 0 }
   0xa   : > { %p40_p3 = scmp.ne.s32.totalorder %s1297_s10, %s1293_s9  ;;  %p41_p4 = scmp.eq.s32.totalorder %s1353_s13, 0 }
   0xb   : > { %s1369_s18 = scalar_select %p25_p1, %s1301_s11, %s27_s16  }
   0xc   : > { %p1371_p5 = por %p35_p2, %p34_p0  ;;  %p1375_p6 = por %p41_p4, %p40_p3 }
   0xd   : > { %p1812_p7 = scmp.eq.s32.totalorder %s1353_s13, 1  ;;  %p70_p8 = scmp.eq.s32.totalorder %s958_s14, 1 }
   0xe   : > { %p1011_p10 = scmp.lt.s32.totalorder %s1305_s12, 2  ;;  %s111_s23 = sand.u32 1, %s1301_s11  }
   0xf   : > { %p1384_p11 = por %p1812_p7, %p34_p0  ;;  %p1388_p12 = por %p70_p8, %p40_p3 }
  0x10   : > { %s991_s24 = sshll.u32 %s1305_s12, 7  ;;  %s961_s25 = sshll.u32 %s111_s23, 7 }
  0x11   : > { %s120_s28 = scalar_lea.hbm %s1809_s0, %s991_s24  ;;  %s115_s30 = scalar_lea.vmem [#allocation2], %s961_s25 }
  0x12   : > { %s121_s29 = sshll.u32 %s120_s28, 4  ;;  %s123_s3 = sshll.u32 %s115_s30, 4  ;;  %s122_s29 = int_to_ptr.hbm [resolvable:$true] %s121_s29  ;;  %s124_s3 = int_to_ptr.vmem [resolvable:$true] %s123_s3 }
  0x13   : > { %p1399_p13 = pnand %p1011_p10, %p1371_p5  ;;  %p964_p0 = scmp.ge.s32.totalorder %s1305_s12, 1 }
  0x14   : > { %p131_p1 = scmp.lt.s32.totalorder %s1305_s12, 3  ;;  %s112_s5 = scalar_lea.sflag [#allocation3], %s111_s23 }
  0x15   : > { %s1177_s6 = sshra.s32 %s122_s29, 4  ;;  %p1181_p3 = pneg %p1399_p13  ;;  %s1178_s6 = int_to_ptr.hbm [resolvable:$true] %s1177_s6 }
  0x16   : > { %s1179_s7 = scalar_lea.hbm %s1178_s6, 128  ;;  %s1184_s16 = scalar_lea.hbm %s1809_s0, 256 }
  0x17   : > { %p1180_p2 = scmp.ne.s32.totalorder %s1178_s6, %s1179_s7  ;;  %p1185_p5 = scmp.lt.s32.totalorder %s1178_s6, %s1809_s0 }
  0x18   : > { %p1186_p10 = scmp.lt.s32.totalorder %s1184_s16, %s1179_s7 }
  0x19   : > { %p1182_p4 = pnand %p1181_p3, %p1180_p2 }
  0x1a   : > { %p1187_p9 = por %p1186_p10, %p1185_p5 }
  0x1b   : > { %p1183_p8 = pneg %p1182_p4 }
  0x1d   : > { %p1188_p7 = pnand %p1187_p9, %p1183_p8 }
  0x1f   : > { %1191 = shalt.err (!%p1188_p7)
}
  0x20   : > { %s1307_s23 = smov 128   ;;  %s1308_s24 = smov 8  }
  0x21   : > { %1006 = dma.hbm_to_vmem [thread:$0]  (!%p1399_p13), %s122_s29, 2048, %s124_s3, %s112_s5, %s1307_s23, %s1307_s23, %s1308_s24  }
  0x22   : > { %p132_p2 = pnand %p964_p0, %p131_p1 }
  0x23   : > { %s1420_s25 = sand.u32 (!%p132_p2), 1, %s1297_s10  }
  0x24   : > { %135 = sbr.rel (%p132_p2) target bundleno = 582 (0x246), region = 24  ;;  %s965_s26 = sshll.u32 (!%p132_p2), %s1420_s25, 7 }
  0x25   : > { %s138_s27 = scalar_lea.sflag (!%p132_p2), [#allocation3], %s1420_s25  ;;  %s1424_s28 = scalar_lea.vmem (!%p132_p2), [#allocation2], %s965_s26 }
  0x29   : > { %1280 = dma.done.wait (%p1375_p6), %s138_s27, 2048  }
  0x2a   : > { %1282 = vsyncadd (%p1375_p6), %s138_s27, 4294965248  ;;  %v165_v0 = vld [vmem:[%s1424_s28 + $0x10] sm:$0xff]  ;;  %v166_v1 = vld [vmem:[%s1424_s28 + $0x18] sm:$0xff]  ;;  %vm275_vm1 = vcmask 1040384   ;;  %v1309_v6 = vmov 0.0   ;;  %vm356_vm7 = vcmask 1046528  }
  0x2b   : > { %v167_v2 = vld [vmem:[%s1424_s28 + $0x20] sm:$0xff]  ;;  %v168_v3 = vld [vmem:[%s1424_s28 + $0x28] sm:$0xff]  ;;  %v169_v4 = vld [vmem:[%s1424_s28 + $0x30] sm:$0xff]  ;;  %vm181_vm0 = vcmp.lt.f32.partialorder %v165_v0, 0.011111111  ;;  %vm429_vm8 = vcmask 1045504  }
  0x2c   : > { %v170_v5 = vld [vmem:[%s1424_s28 + $0x38] sm:$0xff]  ;;  %vm182_vm2 = vcmp.lt.f32.partialorder %v166_v1, 0.011111111  ;;  %vm183_vm3 = vcmp.lt.f32.partialorder %v167_v2, 0.011111111  ;;  %v969_v7 = vsel %vm181_vm0, 1.0, %v1309_v6 }
  0x2d   : > { %vm184_vm4 = vcmp.lt.f32.partialorder %v168_v3, 0.011111111  ;;  %vm185_vm5 = vcmp.lt.f32.partialorder %v169_v4, 0.011111111  ;;  %vm186_vm6 = vcmp.lt.f32.partialorder %v170_v5, 0.011111111 }
  0x2e   : > { %v970_v8 = vsel %vm182_vm2, 1.0, %v1309_v6  ;;  %v971_v9 = vsel %vm183_vm3, 1.0, %v1309_v6  ;;  %v972_v10 = vsel %vm184_vm4, 1.0, %v1309_v6  ;;  %v1441_v11 = vsel %vm185_vm5, 1.0, %v1309_v6  ;;  %v163_v13 = vld [vmem:[%s1424_s28] sm:$0xff]  ;;  %v164_v14 = vld [vmem:[%s1424_s28 + $0x8] sm:$0xff] }
  0x2f   : > { %v1444_v12 = vsel %vm186_vm6, 1.0, %v1309_v6  ;;  %v231_v15 = vmax.f32 %v969_v7, %v971_v9  ;;  %v232_v16 = vmax.f32 %v970_v8, %v972_v10  ;;  %vm179_vm9 = vcmp.lt.f32.partialorder %v163_v13, 0.011111111  ;;  %v171_v17 = vld [vmem:[%s1424_s28 + $0x40] sm:$0xff]  ;;  %v172_v18 = vld [vmem:[%s1424_s28 + $0x48] sm:$0xff]  ;;  %s1310_s20 = smov 1  }
  0x30   : > { %vm180_vm10 = vcmp.lt.f32.partialorder %v164_v14, 0.011111111  ;;  %v967_v19 = vsel %vm179_vm9, 1.0, %v1309_v6  ;;  %vm187_vm11 = vcmp.lt.f32.partialorder %v171_v17, 0.011111111  ;;  %v233_v33 = vmax.f32 %v971_v9, %v1441_v11  ;;  %s1311_s29 = smov 127  }
  0x31   : > { %v968_v20 = vsel %vm180_vm10, 1.0, %v1309_v6  ;;  %vm188_vm12 = vcmp.lt.f32.partialorder %v172_v18, 0.011111111  ;;  %v247_v21 = vmax.f32 %v231_v15, %v1441_v11  ;;  %v248_v22 = vmax.f32 %v232_v16, %v1444_v12  ;;  %s1312_s30 = smov 126   ;;  %s966_s3 = sshll.u32 %s1420_s25, 6 }
  0x32   : > { %v227_v23 = vmax.f32 %v967_v19, 0.0  ;;  %v228_v24 = vmax.f32 %v968_v20, 0.0  ;;  %v229_v25 = vmax.f32 %v967_v19, %v969_v7  ;;  %v230_v26 = vmax.f32 %v968_v20, %v970_v8  ;;  %s1653_s4 = scalar_lea.vmem [#allocation5], %s966_s3  ;;  %p983_p6 = scmp.ne.s32.totalorder %s1353_s13, 0 }
  0x33   : > { %v1455_v27 = vsel %vm187_vm11, 1.0, %v1309_v6  ;;  %v1458_v28 = vsel %vm188_vm12, 1.0, %v1309_v6  ;;  %v282_v29 = vrot.slane %v247_v21, 7  ;;  %v283_v30 = vrot.slane %v248_v22, 7 }
  0x34   : > { %v243_v31 = vmax.f32 %v227_v23, %v969_v7  ;;  %v244_v32 = vmax.f32 %v228_v24, %v970_v8  ;;  %v234_v34 = vmax.f32 %v972_v10, %v1444_v12  ;;  %v245_v35 = vmax.f32 %v229_v25, %v971_v9 }
  0x35   : > { %v1462_v36 = vmax.f32 %v230_v26, %v972_v10  ;;  %v284_v37 = vsel %vm275_vm1, %v282_v29, %v283_v30  ;;  %v326_v38 = vsel %vm275_vm1, 0.0, %v282_v29  ;;  %v334_v39 = vsel %vm275_vm1, %v283_v30, 0.0 }
  0x36   : > { %v276_v40 = vrot.slane %v243_v31, 7  ;;  %v367_v41 = vrot.slane %v326_v38, 1  ;;  %v368_v42 = vrot.slane %v284_v37, 1  ;;  %v370_v43 = vrot.slane %v334_v39, 1 }
  0x37   : > { %v440_v44 = vrot.slane %v326_v38, 2  ;;  %v441_v45 = vrot.slane %v284_v37, 2  ;;  %v443_v46 = vrot.slane %v334_v39, 2  ;;  %v277_v47 = vrot.slane %v244_v32, 7 }
  0x38   : > { %v324_v48 = vsel %vm275_vm1, 0.0, %v276_v40  ;;  %v369_v49 = vsel %vm356_vm7, %v367_v41, %v368_v42  ;;  %v371_v50 = vsel %vm356_vm7, %v368_v42, %v370_v43  ;;  %v249_v59 = vmax.f32 %v233_v33, %v1455_v27  ;;  %v174_v43 = vld [vmem:[%s1424_s28 + $0x58] sm:$0xff] }
  0x39   : > { %v357_v51 = vrot.slane %v324_v48, 1  ;;  %v430_v52 = vrot.slane %v324_v48, 2  ;;  %v417_v53 = vmax.f32 %v326_v38, %v369_v49  ;;  %v418_v54 = vmax.f32 %v284_v37, %v371_v50  ;;  %v173_v38 = vld [vmem:[%s1424_s28 + $0x50] sm:$0xff] }
  0x3a   : > { %v442_v55 = vsel %vm429_vm8, %v440_v44, %v441_v45  ;;  %v444_v56 = vsel %vm429_vm8, %v441_v45, %v443_v46  ;;  %v278_v57 = vsel %vm275_vm1, %v276_v40, %v277_v47  ;;  %v332_v58 = vsel %vm275_vm1, %v277_v47, 0.0 }
  0x3b   : > { %v250_v60 = vmax.f32 %v234_v34, %v1458_v28  ;;  %v490_v61 = vmax.f32 %v417_v53, %v442_v55  ;;  %v491_v62 = vmax.f32 %v418_v54, %v444_v56  ;;  %v358_v63 = vrot.slane %v278_v57, 1  ;;  %v177_v53 = vld [vmem:[%s1424_s28 + $0x70] sm:$0xff]  ;;  %v178_v54 = vld [vmem:[%s1424_s28 + $0x78] sm:$0xff] }
  0x3c   : > { %v360_v0 = vrot.slane %v332_v58, 1  ;;  %v431_v1 = vrot.slane %v278_v57, 2  ;;  %v433_v2 = vrot.slane %v332_v58, 2  ;;  %v285_v3 = vrot.slane %v249_v59, 7 }
  0x3d   : > { %v286_v4 = vrot.slane %v250_v60, 7  ;;  %v1067_v5 = vpack.i.bf16 %v491_v62, %v490_v61  ;;  %v359_v7 = vsel %vm356_vm7, %v357_v51, %v358_v63  ;;  %v279_v9 = vrot.slane %v245_v35, 7 }
  0x3e   : > { %v361_v8 = vsel %vm356_vm7, %v358_v63, %v360_v0  ;;  %v413_v10 = vmax.f32 %v324_v48, %v359_v7  ;;  %v432_v14 = vsel %vm429_vm8, %v430_v52, %v431_v1  ;;  %v434_v15 = vsel %vm429_vm8, %v431_v1, %v433_v2  ;;  %v175_v48 = vld [vmem:[%s1424_s28 + $0x60] sm:$0xff]  ;;  %v176_v52 = vld [vmem:[%s1424_s28 + $0x68] sm:$0xff] }
  0x3f   : > { %v414_v13 = vmax.f32 %v278_v57, %v361_v8  ;;  %1068 = vrot.lane.b32.xlu1 %v1067_v5, %s1310_s20  ;;  %v287_v16 = vsel %vm275_vm1, %v285_v3, %v286_v4  ;;  %v327_v17 = vsel %vm275_vm1, 0.0, %v285_v3  ;;  %v335_v18 = vsel %vm275_vm1, %v286_v4, 0.0 }
  0x40   : > { %v280_v19 = vrot.slane %v1462_v36, 7  ;;  %v486_v20 = vmax.f32 %v413_v10, %v432_v14  ;;  %v372_v22 = vrot.slane %v327_v17, 1  ;;  %v373_v23 = vrot.slane %v287_v16, 1 }
  0x41   : > { %v487_v21 = vmax.f32 %v414_v13, %v434_v15  ;;  %v375_v24 = vrot.slane %v335_v18, 1  ;;  %v445_v25 = vrot.slane %v327_v17, 2  ;;  %v446_v26 = vrot.slane %v287_v16, 2 }
  0x42   : > { %v448_v29 = vrot.slane %v335_v18, 2  ;;  %v374_v31 = vsel %vm356_vm7, %v372_v22, %v373_v23  ;;  %v281_v32 = vsel %vm275_vm1, %v279_v9, %v280_v19  ;;  %v325_v33 = vsel %vm275_vm1, 0.0, %v279_v9 }
  0x43   : > { %v1057_v30 = vpack.i.bf16 %v487_v21, %v486_v20  ;;  %v376_v34 = vsel %vm356_vm7, %v373_v23, %v375_v24  ;;  %v419_v35 = vmax.f32 %v327_v17, %v374_v31  ;;  %v447_v36 = vsel %vm429_vm8, %v445_v25, %v446_v26 }
  0x44   : > { %v449_v37 = vsel %vm429_vm8, %v446_v26, %v448_v29  ;;  %v420_v39 = vmax.f32 %v287_v16, %v376_v34  ;;  %v333_v40 = vsel %vm275_vm1, %v280_v19, 0.0  ;;  %v362_v41 = vrot.slane %v325_v33, 1 }
  0x45   : > { %1058 = vrot.lane.b32.xlu0 %v1057_v30, %s1310_s20  ;;  %v363_v42 = vrot.slane %v281_v32, 1  ;;  %v492_v44 = vmax.f32 %v419_v35, %v447_v36  ;;  %v365_v45 = vrot.slane %v333_v40, 1  ;;  %v435_v46 = vrot.slane %v325_v33, 2 }
  0x46   : > { %v436_v47 = vrot.slane %v281_v32, 2  ;;  %v493_v49 = vmax.f32 %v420_v39, %v449_v37  ;;  %v438_v51 = vrot.slane %v333_v40, 2  ;;  %vm189_vm13 = vcmp.lt.f32.partialorder %v173_v38, 0.011111111 }
  0x47   : > { %v364_v50 = vsel %vm356_vm7, %v362_v41, %v363_v42  ;;  %v366_v55 = vsel %vm356_vm7, %v363_v42, %v365_v45  ;;  %vm190_vm14 = vcmp.lt.f32.partialorder %v174_v43, 0.011111111  ;;  %vm191_vm15 = vcmp.lt.f32.partialorder %v175_v48, 0.011111111 }
  0x48   : > { %v415_v56 = vmax.f32 %v325_v33, %v364_v50  ;;  %v437_v57 = vsel %vm429_vm8, %v435_v46, %v436_v47  ;;  %v1072_v58 = vpack.i.bf16 %v493_v49, %v492_v44  ;;  %v416_v59 = vmax.f32 %v281_v32, %v366_v55 }
  0x49   : > { %v439_v60 = vsel %vm429_vm8, %v436_v47, %v438_v51  ;;  %vm192_vm0 = vcmp.lt.f32.partialorder %v176_v52, 0.011111111  ;;  %vm193_vm2 = vcmp.lt.f32.partialorder %v177_v53, 0.011111111  ;;  %vm194_vm3 = vcmp.lt.f32.partialorder %v178_v54, 0.011111111 }
  0x4a   : > { %v488_v61 = vmax.f32 %v415_v56, %v437_v57  ;;  %1073 = vrot.lane.b32.xlu1 %v1072_v58, %s1310_s20  ;;  %v489_v62 = vmax.f32 %v416_v59, %v439_v60  ;;  %v977_v63 = vsel %vm189_vm13, 1.0, %v1309_v6  ;;  %v978_v0 = vsel %vm190_vm14, 1.0, %v1309_v6 }
  0x4b   : > { %v979_v1 = vsel %vm191_vm15, 1.0, %v1309_v6  ;;  %v980_v2 = vsel %vm192_vm0, 1.0, %v1309_v6  ;;  %v981_v3 = vsel %vm193_vm2, 1.0, %v1309_v6  ;;  %v982_v4 = vsel %vm194_vm3, 1.0, %v1309_v6 }
  0x4c   : > { %v239_v5 = vmax.f32 %v977_v63, %v979_v1  ;;  %v1062_v7 = vpack.i.bf16 %v489_v62, %v488_v61  ;;  %v240_v8 = vmax.f32 %v978_v0, %v980_v2  ;;  %v235_v9 = vmax.f32 %v1441_v11, %v1455_v27 }
  0x4d   : > { %v236_v10 = vmax.f32 %v1444_v12, %v1458_v28  ;;  %v241_v14 = vmax.f32 %v979_v1, %v981_v3  ;;  %v242_v15 = vmax.f32 %v980_v2, %v982_v4  ;;  %v237_v16 = vmax.f32 %v1455_v27, %v977_v63 }
  0x4e   : > { %v255_v13 = vmax.f32 %v239_v5, %v981_v3  ;;  %1063 = vrot.lane.b32.xlu0 %v1062_v7, %s1310_s20  ;;  %v256_v17 = vmax.f32 %v240_v8, %v982_v4  ;;  %v251_v18 = vmax.f32 %v235_v9, %v977_v63  ;;  %v238_v6 = vmax.f32 %v1458_v28, %v978_v0 }
  0x4f   : > { %v252_v19 = vmax.f32 %v236_v10, %v978_v0  ;;  %v257_v21 = vmax.f32 %v241_v14, 0.0  ;;  %v258_v22 = vmax.f32 %v242_v15, 0.0  ;;  %v1517_v23 = vmax.f32 %v237_v16, %v979_v1 }
  0x50   : > { %v294_v20 = vrot.slane %v255_v13, 7  ;;  %v295_v11 = vrot.slane %v256_v17, 7  ;;  %v288_v24 = vrot.slane %v251_v18, 7  ;;  %v254_v25 = vmax.f32 %v238_v6, %v980_v2 }
  0x51   : > { %v289_v12 = vrot.slane %v252_v19, 7  ;;  %v297_v29 = vrot.slane %v257_v21, 7  ;;  %v298_v27 = vrot.slane %v258_v22, 7  ;;  %v291_v30 = vrot.slane %v1517_v23, 7 }
  0x52   : > { %v330_v26 = vsel %vm275_vm1, 0.0, %v294_v20  ;;  %v296_v31 = vsel %vm275_vm1, %v294_v20, %v295_v11  ;;  %v338_v32 = vsel %vm275_vm1, %v295_v11, 0.0  ;;  %v328_v39 = vsel %vm275_vm1, 0.0, %v288_v24 }
  0x53   : > { %v387_v28 = vrot.slane %v330_v26, 1  ;;  %v460_v33 = vrot.slane %v330_v26, 2  ;;  %v388_v34 = vrot.slane %v296_v31, 1  ;;  %v390_v35 = vrot.slane %v338_v32, 1 }
  0x54   : > { %v461_v36 = vrot.slane %v296_v31, 2  ;;  %v463_v37 = vrot.slane %v338_v32, 2  ;;  %v290_v38 = vsel %vm275_vm1, %v288_v24, %v289_v12  ;;  %v336_v40 = vsel %vm275_vm1, %v289_v12, 0.0 }
  0x55   : > { %v299_v41 = vsel %vm275_vm1, %v297_v29, %v298_v27  ;;  %v389_v42 = vsel %vm356_vm7, %v387_v28, %v388_v34  ;;  %v391_v43 = vsel %vm356_vm7, %v388_v34, %v390_v35  ;;  %v377_v48 = vrot.slane %v328_v39, 1 }
  0x56   : > { %v462_v44 = vsel %vm429_vm8, %v460_v33, %v461_v36  ;;  %v464_v45 = vsel %vm429_vm8, %v461_v36, %v463_v37  ;;  %v425_v46 = vmax.f32 %v330_v26, %v389_v42  ;;  %v426_v47 = vmax.f32 %v296_v31, %v391_v43 }
  0x57   : > { %v378_v49 = vrot.slane %v290_v38, 1  ;;  %v380_v50 = vrot.slane %v336_v40, 1  ;;  %v450_v51 = vrot.slane %v328_v39, 2  ;;  %v451_v52 = vrot.slane %v290_v38, 2 }
  0x58   : > { %v453_v53 = vrot.slane %v336_v40, 2  ;;  %v498_v54 = vmax.f32 %v425_v46, %v462_v44  ;;  %v499_v55 = vmax.f32 %v426_v47, %v464_v45  ;;  %v331_v57 = vsel %vm275_vm1, 0.0, %v297_v29 }
  0x59   : > { %v379_v56 = vsel %vm356_vm7, %v377_v48, %v378_v49  ;;  %v381_v58 = vsel %vm356_vm7, %v378_v49, %v380_v50  ;;  %v452_v60 = vsel %vm429_vm8, %v450_v51, %v451_v52  ;;  %v339_v0 = vsel %vm275_vm1, %v298_v27, 0.0 }
  0x5a   : > { %v421_v59 = vmax.f32 %v328_v39, %v379_v56  ;;  %v454_v61 = vsel %vm429_vm8, %v451_v52, %v453_v53  ;;  %v1087_v62 = vpack.i.bf16 %v499_v55, %v498_v54  ;;  %v422_v63 = vmax.f32 %v290_v38, %v381_v58 }
  0x5b   : > { %v392_v1 = vrot.slane %v331_v57, 1  ;;  %v393_v3 = vrot.slane %v299_v41, 1  ;;  %v395_v4 = vrot.slane %v339_v0, 1  ;;  %v465_v5 = vrot.slane %v331_v57, 2 }
  0x5c   : > { %v494_v2 = vmax.f32 %v421_v59, %v452_v60  ;;  %1088 = vrot.lane.b32.xlu0 %v1087_v62, %s1310_s20  ;;  %v495_v7 = vmax.f32 %v422_v63, %v454_v61  ;;  %v466_v8 = vrot.slane %v299_v41, 2  ;;  %v468_v9 = vrot.slane %v339_v0, 2 }
  0x5d   : > { %v292_v10 = vrot.slane %v254_v25, 7  ;;  %v394_v13 = vsel %vm356_vm7, %v392_v1, %v393_v3  ;;  %v396_v14 = vsel %vm356_vm7, %v393_v3, %v395_v4  ;;  %v329_v15 = vsel %vm275_vm1, 0.0, %v291_v30 }
  0x5e   : > { %v1077_v16 = vpack.i.bf16 %v495_v7, %v494_v2  ;;  %v427_v17 = vmax.f32 %v331_v57, %v394_v13  ;;  %v428_v18 = vmax.f32 %v299_v41, %v396_v14  ;;  %v467_v19 = vsel %vm429_vm8, %v465_v5, %v466_v8 }
  0x5f   : > { %v469_v6 = vsel %vm429_vm8, %v466_v8, %v468_v9  ;;  %v293_v20 = vsel %vm275_vm1, %v291_v30, %v292_v10  ;;  %v337_v21 = vsel %vm275_vm1, %v292_v10, 0.0  ;;  %v382_v22 = vrot.slane %v329_v15, 1 }
  0x60   : > { %1078 = vrot.lane.b32.xlu2 %v1077_v16, %s1310_s20  ;;  %v500_v23 = vmax.f32 %v427_v17, %v467_v19  ;;  %v501_v11 = vmax.f32 %v428_v18, %v469_v6  ;;  %v383_v24 = vrot.slane %v293_v20, 1  ;;  %v385_v12 = vrot.slane %v337_v21, 1 }
  0x61   : > { %v455_v25 = vrot.slane %v329_v15, 2  ;;  %v456_v26 = vrot.slane %v293_v20, 2  ;;  %v458_v29 = vrot.slane %v337_v21, 2  ;;  %vm566_vm1 = vcmask 7168  }
  0x62   : > { %v1092_v27 = vpack.i.bf16 %v501_v11, %v500_v23  ;;  %v384_v31 = vsel %vm356_vm7, %v382_v22, %v383_v24  ;;  %v386_v32 = vsel %vm356_vm7, %v383_v24, %v385_v12  ;;  %vm583_vm4 = vcmask 138240  }
  0x63   : > { %v423_v28 = vmax.f32 %v329_v15, %v384_v31  ;;  %v424_v33 = vmax.f32 %v293_v20, %v386_v32  ;;  %v457_v30 = vsel %vm429_vm8, %v455_v25, %v456_v26  ;;  %v459_v34 = vsel %vm429_vm8, %v456_v26, %v458_v29 }
  0x64   : > { %1093 = vrot.lane.b32.xlu1 %v1092_v27, %s1310_s20  ;;  %vm776_vm5 = vcmask 125952  }
  0x65   : > { %v496_v35 = vmax.f32 %v423_v28, %v457_v30  ;;  %v497_v36 = vmax.f32 %v424_v33, %v459_v34 }
  0x67   : > { %v1082_v37 = vpack.i.bf16 %v497_v36, %v496_v35 }
  0x69   : > { %1083 = vrot.lane.b32.xlu2 %v1082_v37, %s1310_s20 }
  0xb1   : > { %v1069_v38 = vpop.permute.xlu1 %1068 }
  0xb2   : > { %v1071_v39 = vunpack.i.h.bf16 %v1069_v38  ;;  %v1070_v40 = vunpack.i.l.bf16 %v1069_v38 }
  0xb4   : > { %v572_v41 = vsel %vm566_vm1, 0.0, %v1071_v39  ;;  %v571_v42 = vsel %vm566_vm1, 0.0, %v1070_v40 }
  0xb5   : > { %v1555_v43 = vsel %vm583_vm4, %v572_v41, 0.0  ;;  %v1558_v44 = vsel %vm583_vm4, %v571_v42, 0.0 }
  0xb6   : > { %v1562_v46 = vpack.i.bf16 %v1555_v43, %v1558_v44 }
  0xb7   : > { %v1059_v45 = vpop.permute.xlu0 %1058 }
  0xb8   : > { %v1061_v47 = vunpack.i.h.bf16 %v1059_v45  ;;  %v1060_v48 = vunpack.i.l.bf16 %v1059_v45  ;;  %1108 = vrot.lane.b32.xlu1 %v1562_v46, %s1311_s29 }
  0xba   : > { %v568_v49 = vsel %vm566_vm1, 0.0, %v1061_v47  ;;  %v567_v50 = vsel %vm566_vm1, 0.0, %v1060_v48  ;;  %v1079_v51 = vpop.permute.xlu2 %1078 }
  0xbb   : > { %v1569_v52 = vsel %vm583_vm4, %v568_v49, 0.0  ;;  %v1572_v53 = vsel %vm583_vm4, %v567_v50, 0.0  ;;  %v1081_v2 = vunpack.i.h.bf16 %v1079_v51  ;;  %v1080_v3 = vunpack.i.l.bf16 %v1079_v51 }
  0xbc   : > { %v1097_v54 = vpack.i.bf16 %v1569_v52, %v1572_v53  ;;  %v1074_v55 = vpop.permute.xlu1 %1073 }
  0xbd   : > { %v1076_v56 = vunpack.i.h.bf16 %v1074_v55  ;;  %v1075_v57 = vunpack.i.l.bf16 %v1074_v55  ;;  %v576_v17 = vsel %vm566_vm1, 0.0, %v1081_v2  ;;  %v575_v18 = vsel %vm566_vm1, 0.0, %v1080_v3 }
  0xbe   : > { %1098 = vrot.lane.b32.xlu2 %v1097_v54, %s1311_s29  ;;  %v1606_v21 = vsel %vm583_vm4, %v576_v17, 0.0  ;;  %v1609_v22 = vsel %vm583_vm4, %v575_v18, 0.0 }
  0xbf   : > { %v574_v58 = vsel %vm566_vm1, 0.0, %v1076_v56  ;;  %v573_v59 = vsel %vm566_vm1, 0.0, %v1075_v57  ;;  %v1117_v23 = vpack.i.bf16 %v1606_v21, %v1609_v22 }
  0xc0   : > { %v1580_v60 = vsel %vm583_vm4, %v574_v58, 0.0  ;;  %v1583_v61 = vsel %vm583_vm4, %v573_v59, 0.0  ;;  %v1064_v62 = vpop.permute.xlu0 %1063 }
  0xc1   : > { %v1066_v63 = vunpack.i.h.bf16 %v1064_v62  ;;  %v1065_v0 = vunpack.i.l.bf16 %v1064_v62  ;;  %v1112_v1 = vpack.i.bf16 %v1580_v60, %v1583_v61 }
  0xc3   : > { %v1084_v4 = vpop.permute.xlu2 %1083  ;;  %v570_v5 = vsel %vm566_vm1, 0.0, %v1066_v63  ;;  %v569_v7 = vsel %vm566_vm1, 0.0, %v1065_v0 }
  0xc4   : > { %v1086_v8 = vunpack.i.h.bf16 %v1084_v4  ;;  %v1085_v9 = vunpack.i.l.bf16 %v1084_v4  ;;  %v587_v10 = vsel %vm583_vm4, %v570_v5, 0.0  ;;  %v586_v13 = vsel %vm583_vm4, %v569_v7, 0.0 }
  0xc5   : > { %v1102_v14 = vpack.i.bf16 %v587_v10, %v586_v13 }
  0xc6   : > { %1113 = vrot.lane.b32.xlu2 %v1112_v1, %s1311_s29  ;;  %v578_v15 = vsel %vm566_vm1, 0.0, %v1086_v8  ;;  %v577_v16 = vsel %vm566_vm1, 0.0, %v1085_v9 }
  0xc7   : > { %v1597_v19 = vsel %vm583_vm4, %v578_v15, 0.0  ;;  %v1600_v6 = vsel %vm583_vm4, %v577_v16, 0.0  ;;  %1103 = vrot.lane.b32.xlu0 %v1102_v14, %s1311_s29 }
  0xc8   : > { %v1122_v20 = vpack.i.bf16 %v1597_v19, %v1600_v6 }
  0xca   : > { %1123 = vrot.lane.b32.xlu1 %v1122_v20, %s1311_s29 }
  0xce   : > { %v1089_v11 = vpop.permute.xlu0 %1088 }
  0xcf   : > { %v1091_v24 = vunpack.i.h.bf16 %v1089_v11  ;;  %v1090_v12 = vunpack.i.l.bf16 %v1089_v11  ;;  %1118 = vrot.lane.b32.xlu0 %v1117_v23, %s1311_s29 }
  0xd1   : > { %v580_v25 = vsel %vm566_vm1, 0.0, %v1091_v24  ;;  %v579_v26 = vsel %vm566_vm1, 0.0, %v1090_v12 }
  0xd2   : > { %v1618_v29 = vsel %vm583_vm4, %v580_v25, 0.0  ;;  %v1621_v27 = vsel %vm583_vm4, %v579_v26, 0.0  ;;  %1138 = vrot.lane.b32.xlu1 %v1097_v54, %s1312_s30 }
  0xd3   : > { %v1127_v31 = vpack.i.bf16 %v1618_v29, %v1621_v27 }
  0xd5   : > { %1128 = vrot.lane.b32.xlu2 %v1127_v31, %s1311_s29 }
  0xd6   : > { %v1094_v32 = vpop.permute.xlu1 %1093 }
  0xd7   : > { %v1096_v28 = vunpack.i.h.bf16 %v1094_v32  ;;  %v1095_v33 = vunpack.i.l.bf16 %v1094_v32 }
  0xd9   : > { %v582_v30 = vsel %vm566_vm1, 0.0, %v1096_v28  ;;  %v581_v34 = vsel %vm566_vm1, 0.0, %v1095_v33 }
  0xda   : > { %v1629_v35 = vsel %vm583_vm4, %v582_v30, 0.0  ;;  %v1632_v36 = vsel %vm583_vm4, %v581_v34, 0.0  ;;  %1153 = vrot.lane.b32.xlu1 %v1112_v1, %s1312_s30 }
  0xdb   : > { %v1132_v37 = vpack.i.bf16 %v1629_v35, %v1632_v36 }
  0xdd   : > { %1133 = vrot.lane.b32.xlu0 %v1132_v37, %s1311_s29  ;;  %1143 = vrot.lane.b32.xlu2 %v1102_v14, %s1312_s30 }
  0xe2   : > { %1168 = vrot.lane.b32.xlu1 %v1127_v31, %s1312_s30 }
  0xe5   : > { %1148 = vrot.lane.b32.xlu0 %v1562_v46, %s1312_s30  ;;  %1158 = vrot.lane.b32.xlu2 %v1117_v23, %s1312_s30 }
  0xed   : > { %1163 = vrot.lane.b32.xlu0 %v1122_v20, %s1312_s30  ;;  %1173 = vrot.lane.b32.xlu2 %v1132_v37, %s1312_s30 }
 0x118   : > { %v1099_v38 = vpop.permute.xlu2 %1098 }
 0x119   : > { %v1101_v59 = vunpack.i.h.bf16 %v1099_v38  ;;  %v1100_v62 = vunpack.i.l.bf16 %v1099_v38 }
 0x11b   : > { %v664_v14 = vmax.f32 %v1572_v53, %v1100_v62 }
 0x120   : > { %v1114_v39 = vpop.permute.xlu2 %1113 }
 0x12a   : > { %v1640_v41 = vpop.permute.xlu1 %1108 }
 0x12f   : > { %v1638_v40 = vpop.permute.xlu2 %1128 }
 0x137   : > { %v1144_v42 = vpop.permute.xlu2 %1143 }
 0x138   : > { %v1146_v49 = vunpack.i.h.bf16 %v1144_v42  ;;  %v1145_v50 = vunpack.i.l.bf16 %v1144_v42 }
 0x139   : > { %v1104_v45 = vpop.permute.xlu0 %1103 }
 0x13a   : > { %v1106_v47 = vunpack.i.h.bf16 %v1104_v45  ;;  %v1105_v48 = vunpack.i.l.bf16 %v1104_v45 }
 0x13c   : > { %v1642_v51 = vpop.permute.xlu1 %1123  ;;  %v667_v54 = vmax.f32 %v587_v10, %v1106_v47  ;;  %v666_v46 = vmax.f32 %v586_v13, %v1105_v48  ;;  %v665_v13 = vmax.f32 %v1569_v52, %v1101_v59  ;;  %v1115_v52 = vunpack.i.l.bf16 %v1114_v39 }
 0x13d   : > { %v1131_v48 = vunpack.i.h.bf16 %v1638_v40  ;;  %v1110_v59 = vunpack.i.l.bf16 %v1640_v41 }
 0x13e   : > { %v730_v55 = vmax.f32 %v666_v46, %v1145_v50  ;;  %v731_v56 = vmax.f32 %v667_v54, %v1146_v49  ;;  %v670_v33 = vmax.f32 %v1583_v61, %v1115_v52 }
 0x13f   : > { %v1159_v63 = vpop.permute.xlu2 %1158 }
 0x140   : > { %v1645_v57 = vsub.f32 1.0, %v730_v55  ;;  %v1647_v58 = vsub.f32 1.0, %v731_v56  ;;  %v1161_v5 = vunpack.i.h.bf16 %v1159_v63  ;;  %v1160_v7 = vunpack.i.l.bf16 %v1159_v63 }
 0x141   : > { %v1119_v0 = vpop.permute.xlu0 %1118  ;;  %v1111_v56 = vunpack.i.h.bf16 %v1640_v41 }
 0x142   : > { %v762_v1 = vpack.c.bf16 %v1645_v57, %v1645_v57  ;;  %v763_v2 = vpack.c.bf16 %v1647_v58, %v1647_v58  ;;  %v1121_v3 = vunpack.i.h.bf16 %v1119_v0  ;;  %v1120_v4 = vunpack.i.l.bf16 %v1119_v0 }
 0x144   : > { %779 = vst.msk [vmem:[%s1653_s4 + $0x8] sm:$0xf] %vm776_vm5, %v762_v1  ;;  %v673_v8 = vmax.f32 %v1606_v21, %v1121_v3  ;;  %v672_v9 = vmax.f32 %v1609_v22, %v1120_v4  ;;  %v1139_v10 = vpop.permute.xlu1 %1138  ;;  %v1116_v22 = vunpack.i.h.bf16 %v1114_v39 }
 0x145   : > { %780 = vst.msk [vmem:[%s1653_s4 + $0xc] sm:$0xf] %vm776_vm5, %v763_v2  ;;  %v1141_v15 = vunpack.i.h.bf16 %v1139_v10  ;;  %v1140_v16 = vunpack.i.l.bf16 %v1139_v10  ;;  %v677_v2 = vmax.f32 %v1618_v29, %v1131_v48 }
 0x146   : > { %v736_v17 = vmax.f32 %v672_v9, %v1160_v7  ;;  %v737_v18 = vmax.f32 %v673_v8, %v1161_v5  ;;  %v671_v28 = vmax.f32 %v1580_v60, %v1116_v22  ;;  %v1130_v60 = vunpack.i.l.bf16 %v1638_v40 }
 0x147   : > { %v728_v20 = vmax.f32 %v664_v14, %v1140_v16  ;;  %v729_v23 = vmax.f32 %v665_v13, %v1141_v15  ;;  %v1174_v37 = vpop.permute.xlu2 %1173  ;;  %v669_v5 = vmax.f32 %v1555_v43, %v1111_v56  ;;  %v668_v7 = vmax.f32 %v1558_v44, %v1110_v59 }
 0x148   : > { %v1663_v11 = vsub.f32 1.0, %v736_v17  ;;  %v1665_v21 = vsub.f32 1.0, %v737_v18  ;;  %v1176_v50 = vunpack.i.h.bf16 %v1174_v37  ;;  %v1175_v54 = vunpack.i.l.bf16 %v1174_v37 }
 0x149   : > { %v1667_v24 = vsub.f32 1.0, %v728_v20  ;;  %v1669_v53 = vsub.f32 1.0, %v729_v23  ;;  %v1126_v20 = vunpack.i.h.bf16 %v1642_v51  ;;  %v1125_v23 = vunpack.i.l.bf16 %v1642_v51 }
 0x14a   : > { %v768_v12 = vpack.c.bf16 %v1663_v11, %v1663_v11  ;;  %v769_v25 = vpack.c.bf16 %v1665_v21, %v1665_v21 }
 0x14b   : > { %v760_v26 = vpack.c.bf16 %v1667_v24, %v1667_v24  ;;  %v761_v31 = vpack.c.bf16 %v1669_v53, %v1669_v53 }
 0x14c   : > { %785 = vst.msk [vmem:[%s1653_s4 + $0x20] sm:$0xf] %vm776_vm5, %v768_v12  ;;  %v1154_v32 = vpop.permute.xlu1 %1153 }
 0x14d   : > { %786 = vst.msk [vmem:[%s1653_s4 + $0x24] sm:$0xf] %vm776_vm5, %v769_v25  ;;  %v1156_v30 = vunpack.i.h.bf16 %v1154_v32  ;;  %v1155_v34 = vunpack.i.l.bf16 %v1154_v32  ;;  %v674_v32 = vmax.f32 %v1600_v6, %v1125_v23 }
 0x14e   : > { %777 = vst.msk [vmem:[%s1653_s4] sm:$0xf] %vm776_vm5, %v760_v26 }
 0x14f   : > { %778 = vst.msk [vmem:[%s1653_s4 + $0x4] sm:$0xf] %vm776_vm5, %v761_v31  ;;  %v1134_v38 = vpop.permute.xlu0 %1133  ;;  %v734_v39 = vmax.f32 %v670_v33, %v1155_v34  ;;  %v735_v42 = vmax.f32 %v671_v28, %v1156_v30  ;;  %v675_v31 = vmax.f32 %v1597_v19, %v1126_v20 }
 0x150   : > { %v1136_v45 = vunpack.i.h.bf16 %v1134_v38  ;;  %v1135_v47 = vunpack.i.l.bf16 %v1134_v38 }
 0x151   : > { %v1691_v61 = vsub.f32 1.0, %v734_v39  ;;  %v1693_v49 = vsub.f32 1.0, %v735_v42 }
 0x152   : > { %v679_v46 = vmax.f32 %v1629_v35, %v1136_v45  ;;  %v678_v55 = vmax.f32 %v1632_v36, %v1135_v47  ;;  %v676_v35 = vmax.f32 %v1621_v27, %v1130_v60 }
 0x153   : > { %v766_v62 = vpack.c.bf16 %v1691_v61, %v1691_v61  ;;  %v767_v40 = vpack.c.bf16 %v1693_v49, %v1693_v49 }
 0x154   : > { %v742_v63 = vmax.f32 %v678_v55, %v1175_v54  ;;  %v743_v0 = vmax.f32 %v679_v46, %v1176_v50  ;;  %v1169_v1 = vpop.permute.xlu1 %1168 }
 0x155   : > { %783 = vst.msk [vmem:[%s1653_s4 + $0x18] sm:$0xf] %vm776_vm5, %v766_v62  ;;  %v1171_v36 = vunpack.i.h.bf16 %v1169_v1  ;;  %v1170_v3 = vunpack.i.l.bf16 %v1169_v1 }
 0x156   : > { %v1707_v4 = vsub.f32 1.0, %v742_v63  ;;  %v1709_v41 = vsub.f32 1.0, %v743_v0  ;;  %784 = vst.msk [vmem:[%s1653_s4 + $0x1c] sm:$0xf] %vm776_vm5, %v767_v40 }
 0x157   : > { %v1149_v8 = vpop.permute.xlu0 %1148  ;;  %v740_v29 = vmax.f32 %v676_v35, %v1170_v3  ;;  %v741_v9 = vmax.f32 %v677_v2, %v1171_v36 }
 0x158   : > { %v774_v27 = vpack.c.bf16 %v1707_v4, %v1707_v4  ;;  %v775_v10 = vpack.c.bf16 %v1709_v41, %v1709_v41  ;;  %v1151_v13 = vunpack.i.h.bf16 %v1149_v8  ;;  %v1150_v14 = vunpack.i.l.bf16 %v1149_v8 }
 0x159   : > { %v756_v15 = vsub.f32 1.0, %v740_v29  ;;  %v757_v16 = vsub.f32 1.0, %v741_v9 }
 0x15a   : > { %791 = vst.msk [vmem:[%s1653_s4 + $0x38] sm:$0xf] %vm776_vm5, %v774_v27  ;;  %v733_v43 = vmax.f32 %v669_v5, %v1151_v13  ;;  %v732_v44 = vmax.f32 %v668_v7, %v1150_v14 }
 0x15b   : > { %792 = vst.msk [vmem:[%s1653_s4 + $0x3c] sm:$0xf] %vm776_vm5, %v775_v10  ;;  %v772_v17 = vpack.c.bf16 %v756_v15, %v756_v15  ;;  %v773_v18 = vpack.c.bf16 %v757_v16, %v757_v16 }
 0x15c   : > { %v749_v22 = vsub.f32 1.0, %v733_v43  ;;  %v748_v52 = vsub.f32 1.0, %v732_v44 }
 0x15d   : > { %789 = vst.msk [vmem:[%s1653_s4 + $0x30] sm:$0xf] %vm776_vm5, %v772_v17 }
 0x15e   : > { %v765_v12 = vpack.c.bf16 %v749_v22, %v749_v22  ;;  %v764_v25 = vpack.c.bf16 %v748_v52, %v748_v52  ;;  %790 = vst.msk [vmem:[%s1653_s4 + $0x34] sm:$0xf] %vm776_vm5, %v773_v18 }
 0x15f   : > { %v1164_v26 = vpop.permute.xlu0 %1163 }
 0x160   : > { %782 = vst.msk [vmem:[%s1653_s4 + $0x14] sm:$0xf] %vm776_vm5, %v765_v12  ;;  %v1166_v28 = vunpack.i.h.bf16 %v1164_v26  ;;  %v1165_v33 = vunpack.i.l.bf16 %v1164_v26 }
 0x161   : > { %781 = vst.msk [vmem:[%s1653_s4 + $0x10] sm:$0xf] %vm776_vm5, %v764_v25 }
 0x162   : > { %v739_v51 = vmax.f32 %v675_v31, %v1166_v28  ;;  %v738_v30 = vmax.f32 %v674_v32, %v1165_v33 }
 0x164   : > { %v755_v34 = vsub.f32 1.0, %v739_v51  ;;  %v754_v37 = vsub.f32 1.0, %v738_v30 }
 0x165   : > { %796 = sbr.rel (%p983_p6) target bundleno = 364 (0x16c), region = 32 }
 0x166   : > { %v771_v38 = vpack.c.bf16 %v755_v34, %v755_v34  ;;  %v770_v39 = vpack.c.bf16 %v754_v37, %v754_v37 }
 0x168   : > { %788 = vst.msk [vmem:[%s1653_s4 + $0x2c] sm:$0xf] %vm776_vm5, %v771_v38 }
 0x169   : > { %787 = vst.msk [vmem:[%s1653_s4 + $0x28] sm:$0xf] %vm776_vm5, %v770_v39 }
 0x16a   : > { %vm797_vm6 = vcmask 0   ;;  %v1313_v19 = vmov 0.0  }
 0x16b   : > { %798 = vst.msk [vmem:[#allocation6] sm:$0x1] %vm797_vm6, %v1313_v19 }
 0x16c PF: > { %vm800_vm7 = vcmask 130048   ;;  %s992_s5 = sshll.u32 %s1353_s13, 6  ;;  %s858_s14 = sshll.u32 %s1653_s4, 4  ;;  %s859_s14 = int_to_ptr.vmem [resolvable:$true] %s858_s14 }
 0x16d   : > { %v801_v6 = vsel %vm800_vm7, %v1667_v24, 0.0  ;;  %v802_v42 = vsel %vm800_vm7, %v1669_v53, 0.0  ;;  %v804_v45 = vsel %vm800_vm7, %v1645_v57, 0.0  ;;  %v806_v48 = vsel %vm800_vm7, %v1647_v58, 0.0  ;;  %s857_s8 = scalar_lea.hbm %s1810_s1, %s992_s5  ;;  %s846_s17 = scalar_lea.sflag [#allocation4], %s1420_s25 }
 0x16e   : > { %v803_v47 = vadd.f32 %v802_v42, %v801_v6  ;;  %v808_v50 = vsel %vm800_vm7, %v748_v52, 0.0  ;;  %v810_v46 = vsel %vm800_vm7, %v749_v22, 0.0  ;;  %v812_v24 = vsel %vm800_vm7, %v1691_v61, 0.0  ;;  %s860_s16 = sshll.u32 %s857_s8, 4  ;;  %s1227_s27 = scalar_lea.hbm %s1810_s1, 128  ;;  %s861_s16 = int_to_ptr.hbm [resolvable:$true] %s860_s16 }
 0x16f   : > { %v814_v53 = vsel %vm800_vm7, %v1693_v49, 0.0  ;;  %v816_v57 = vsel %vm800_vm7, %v1663_v11, 0.0  ;;  %v818_v58 = vsel %vm800_vm7, %v1665_v21, 0.0  ;;  %v820_v63 = vsel %vm800_vm7, %v754_v37, 0.0  ;;  %s1221_s19 = sshra.s32 %s861_s16, 4  ;;  %s1222_s19 = int_to_ptr.hbm [resolvable:$true] %s1221_s19 }
 0x170   : > { %v805_v60 = vadd.f32 %v804_v45, %v803_v47  ;;  %v822_v61 = vsel %vm800_vm7, %v755_v34, 0.0  ;;  %v824_v2 = vsel %vm800_vm7, %v756_v15, 0.0  ;;  %v826_v35 = vsel %vm800_vm7, %v757_v16, 0.0  ;;  %s1223_s23 = scalar_lea.hbm %s1222_s19, 64  ;;  %p1228_p0 = scmp.lt.s32.totalorder %s1222_s19, %s1810_s1 }
 0x171   : > { %v828_v36 = vsel %vm800_vm7, %v1707_v4, 0.0  ;;  %v830_v3 = vsel %vm800_vm7, %v1709_v41, 0.0  ;;  %p1224_p7 = scmp.ne.s32.totalorder %s1222_s19, %s1223_s23  ;;  %p1229_p1 = scmp.lt.s32.totalorder %s1227_s27, %s1223_s23 }
 0x172   : > { %v807_v54 = vadd.f32 %v806_v48, %v805_v60 }
 0x173   : > { %p1225_p9 = pnand %p1224_p7, %p1384_p11  ;;  %p1230_p3 = por %p1229_p1, %p1228_p0 }
 0x174   : > { %v809_v55 = vadd.f32 %v808_v50, %v807_v54 }
 0x175   : > { %p1226_p13 = pneg %p1225_p9 }
 0x176   : > { %v811_v56 = vadd.f32 %v810_v46, %v809_v55 }
 0x177   : > { %p1231_p4 = pnand %p1230_p3, %p1226_p13 }
 0x178   : > { %v813_v59 = vadd.f32 %v812_v24, %v811_v56 }
 0x17a   : > { %v815_v62 = vadd.f32 %v814_v53, %v813_v59 }
 0x17c   : > { %v817_v40 = vadd.f32 %v816_v57, %v815_v62 }
 0x17e   : > { %v819_v0 = vadd.f32 %v818_v58, %v817_v40 }
 0x180   : > { %v821_v1 = vadd.f32 %v820_v63, %v819_v0 }
 0x182   : > { %v823_v49 = vadd.f32 %v822_v61, %v821_v1 }
 0x184   : > { %v825_v11 = vadd.f32 %v824_v2, %v823_v49 }
 0x186   : > { %v827_v21 = vadd.f32 %v826_v35, %v825_v11 }
 0x188   : > { %v829_v5 = vadd.f32 %v828_v36, %v827_v21 }
 0x18a   : > { %v831_v7 = vadd.f32 %v830_v3, %v829_v5 }
 0x18c   : > { %832 = vadd.xlane.f32.xlu0 %v831_v7 }
 0x18d   : > { %1234 = shalt.err (!%p1231_p4)
}
 0x18e   : > { %s1314_s25 = smov 64   ;;  %s1315_s29 = smov 4   ;;  %v799_v13 = vld [vmem:[#allocation6] sm:$0x1]  ;;  %vm843_vm8 = vcmask 0  }
 0x18f   : > { %997 = dma.vmem_to_hbm [thread:$0]  (%p1384_p11), %s859_s14, 1024, %s861_s16, %s846_s17, %s1314_s25, %s1314_s25, %s1315_s29  }
 0x190   : > { %s1316_s30 = smov [#allocation6]   ;;  %s875_s6 = sshll.u32 %s1811_s2, 4  ;;  %s876_s6 = int_to_ptr.hbm [resolvable:$true] %s875_s6 }
 0x191   : > { %s873_s3 = sshll.u32 %s1316_s30, 4  ;;  %p1818_p11 = scmp.eq.s32.totalorder %s1353_s13, 1  ;;  %s874_s3 = int_to_ptr.vmem [resolvable:$true] %s873_s3 }
 0x193   : > { %p1819_p8 = pmov %p1818_p11 }
 0x1ff   : > { %v833_v4 = vpop.xlane.xlu0 %832 }
 0x200   : > { %v834_v41 = vrot.slane %v833_v4, 4 }
 0x202   : > { %v835_v8 = vadd.f32 %v834_v41, %v833_v4 }
 0x204   : > { %v836_v29 = vrot.slane %v835_v8, 2 }
 0x206   : > { %v837_v9 = vadd.f32 %v836_v29, %v835_v8 }
 0x208   : > { %v838_v27 = vrot.slane %v837_v9, 1 }
 0x20a   : > { %v839_v10 = vadd.f32 %v838_v27, %v837_v9 }
 0x20c   : > { %993 = vpush %v839_v10 }
 0x23d   : > { %s994_s7 = spop %993 }
 0x23e   : > { %v841_v14 = vstv %s994_s7 }
 0x23f   : > { %v842_v15 = vadd.f32 %v841_v14, %v799_v13 }
 0x241   : > { %844 = vst.msk [vmem:[#allocation6] sm:$0x1] %vm843_vm8, %v842_v15 }
 0x242   : > { %999 = dma.vmem_to_hbm [thread:$0]  (%p1818_p11), %s874_s3, 16, %s876_s6, [#allocation7]  }
 0x243   : > { %1284 = dma.done.wait (%p1819_p8), [#allocation7], 16   ;;  %p1820_p5 = pmov %p1819_p8 }
 0x245   : > { %1286 = vsyncadd (%p1820_p5), [#allocation7], 4294967280 }
 0x246 PF: > { %s892_s21 = sand.u32 1, %s1293_s9   ;;  %p1821_p10 = scmp.ge.s32.totalorder %s1305_s12, 2 }
 0x247   : > { %s893_s8 = scalar_lea.sflag [#allocation4], %s892_s21 }
 0x248   : > { %p1008_p2 = pnand %p1821_p10, %p1388_p12 }
 0x24a   : > { %p1009_p6 = pneg %p1008_p2 }
 0x24c   : > { %1288 = dma.done.wait (%p1009_p6), %s893_s8, 1024  }
 0x24d   : > { %1290 = vsyncadd (%p1009_p6), %s893_s8, 4294966272  ;;  %p17_p7 = scmp.ge.s32.totalorder %s1357_s15, 4   ;;  %s1822_s9 = smov %s1297_s10 }
 0x24e   : > { %s1823_s10 = smov %s1301_s11  ;;  %s1824_s11 = smov %s1369_s18 }
 0x24f   : > { %s1825_s12 = smov %s1357_s15  ;;  %19 = sbr.rel (!%p17_p7) target bundleno = 6 (0x6), region = 81 }
 0x254   :  { %899 = vsyncpa [#allocation3], 1 }
 0x255   :  { %901 = vsyncpa [#allocation3 + $0x1], 1 }
 0x256   :  { %902 = vsyncpa [#allocation4], 1 }
 0x257   :  { %904 = vsyncpa [#allocation4 + $0x1], 1 }
 0x258   :  { %905 = vsyncpa [#allocation7], 1 }

</bundles_post_ra>
